<compile_context>
chip_gen: v5e
topology: v5e:2x2
jax: 0.10.0
libtpu: 0.0.40
codegen_flags: <defaults>
</compile_context>

<pallas_src>
import functools

import jax
import jax.numpy as jnp
import numpy as np
from jax.experimental import pallas as pl
from jax.experimental.pallas import tpu as pltpu


def _spectral_loss_kernel(pred_ref, target_ref, out_ref, *, L, B, TB, TL, NL,
                          mask_lane, mask_b, compute_spectral):
    s = pl.program_id(1)   # parallel split of the L-tile range (v7x megacore)
    l = pl.program_id(2)   # reduction axis (last, "arbitrary")

    # Output block index is constant across `l`, so out_ref is the resident
    # accumulator for this (batch-block, s) pair.
    @pl.when(l == 0)
    def _init():
        out_ref[...] = jnp.zeros_like(out_ref)

    pred = pred_ref[...].astype(jnp.float32)      # (TB, C, TL)
    target = target_ref[...].astype(jnp.float32)  # (TB, C, TL)

    # Mask ragged tails (out-of-bounds lanes / batch rows contain garbage from
    # the clipped DMA). jnp.where selects, so NaN/Inf garbage cannot leak.
    mask = None
    if mask_lane:
        lane = jax.lax.broadcasted_iota(jnp.int32, (1, 1, TL), 2)
        mask = ((s * NL + l) * TL + lane) < L
    if mask_b:
        brow = jax.lax.broadcasted_iota(jnp.int32, (TB, 1, 1), 0)
        bmask = (pl.program_id(0) * TB + brow) < B
        mask = bmask if mask is None else (mask & bmask)
    if mask is not None:
        zero = jnp.zeros((), jnp.float32)
        pred = jnp.where(mask, pred, zero)
        target = jnp.where(mask, target, zero)

    # MSE partial sum: elementwise VPU work + tree reduce (free filler in an
    # HBM-bound kernel).
    d = pred - target
    mse_part = jnp.sum(d * d)

    # Spectral partial sum: channel-neighbour difference. C is fully resident
    # in every block, so the neighbour pair never crosses a tile boundary.
    if compute_spectral:
        spec_part = jnp.sum(jnp.abs(pred[:, 1:, :] - pred[:, :-1, :]))
    else:
        spec_part = jnp.zeros((), jnp.float32)

    lane_out = jax.lax.broadcasted_iota(jnp.int32, out_ref.shape, 3)
    out_ref[...] += jnp.where(
        lane_out == 0, mse_part,
        jnp.where(lane_out == 1, spec_part, jnp.zeros((), jnp.float32)))


def _round_up(x, m):
    return (x + m - 1) // m * m


# ~2 MiB per input block: big enough to amortize per-step overhead (>=85% of
# HBM roofline in measured elementwise kernels), small enough that
# 2 inputs x 2 pipeline buffers + temporaries fit every chip generation
# (v7x has only 64 MiB physical VMEM).
_TARGET_BLOCK_BYTES = 2 * 1024 * 1024


def _choose_tiling(B, C, L, itemsize):
    lp128 = _round_up(L, 128)
    full_l_bytes = C * lp128 * itemsize
    if full_l_bytes >= _TARGET_BLOCK_BYTES:
        # Large per-batch-element tensor: tile L, one batch element per block.
        TB = 1
        TL = max(128, (_TARGET_BLOCK_BYTES // (C * itemsize)) // 128 * 128)
        TL = min(TL, lp128)
    else:
        # Tiny per-batch-element tensor: take all of L and block over B so
        # each grid step still moves a reasonably large slab.
        TL = lp128
        TB = max(1, min(B, _TARGET_BLOCK_BYTES // full_l_bytes))
    num_l_tiles = pl.cdiv(L, TL)
    NB = pl.cdiv(B, TB)
    # Second parallel axis over the L-tile range: keeps both TensorCores busy
    # on v7x when there is only one batch block. No-op on v5e/v6e (1 TC).
    if NB == 1 and num_l_tiles >= 2 and num_l_tiles % 2 == 0:
        S, NL = 2, num_l_tiles // 2
    else:
        S, NL = 1, num_l_tiles
    return TB, TL, NB, S, NL


def spectral_loss(pred, target, alpha=1.0, beta=0.1):
    """pred, target: (B, C, H, W). Returns scalar f32 loss with the same
    semantics as the PyTorch SpectralLoss.forward."""
    assert pred.shape == target.shape
    B, C, H, W = pred.shape
    L = H * W
    itemsize = pred.dtype.itemsize

    pred3 = pred.reshape(B, C, L)
    target3 = target.reshape(B, C, L)

    TB, TL, NB, S, NL = _choose_tiling(B, C, L, itemsize)
    mask_lane = (L % TL) != 0
    mask_b = (B % TB) != 0
    compute_spectral = C >= 2

    kernel = functools.partial(
        _spectral_loss_kernel,
        L=L, B=B, TB=TB, TL=TL, NL=NL,
        mask_lane=mask_lane, mask_b=mask_b, compute_spectral=compute_spectral)

    block_bytes = TB * C * TL * itemsize
    # 2 inputs x 2 pipeline buffers + elementwise temporaries + margin; clamp
    # so it never exceeds v7x's 64 MiB physical VMEM.
    vmem_limit = int(min(48 * 2**20, max(32 * 2**20, 8 * block_bytes + 4 * 2**20)))

    cost = pl.CostEstimate(
        flops=6 * B * C * L,
        transcendentals=0,
        bytes_accessed=2 * B * C * L * itemsize + NB * S * 128 * 4)

    partials = pl.pallas_call(
        kernel,
        out_shape=jax.ShapeDtypeStruct((NB, S, 1, 128), jnp.float32),
        grid_spec=pltpu.PrefetchScalarGridSpec(
            num_scalar_prefetch=0,
            grid=(NB, S, NL),
            in_specs=[
                pl.BlockSpec((TB, C, TL), lambda nb, s, l: (nb, 0, s * NL + l)),
                pl.BlockSpec((TB, C, TL), lambda nb, s, l: (nb, 0, s * NL + l)),
            ],
            out_specs=pl.BlockSpec((1, 1, 1, 128), lambda nb, s, l: (nb, s, 0, 0)),
        ),
        compiler_params=pltpu.CompilerParams(
            dimension_semantics=("parallel", "parallel", "arbitrary"),
            vmem_limit_bytes=vmem_limit),
        cost_estimate=cost,
    )(pred3, target3)

    mse_sum = jnp.sum(partials[..., 0])
    spec_sum = jnp.sum(partials[..., 1])

    mse = mse_sum / jnp.float32(B * C * L)
    if compute_spectral:
        spectral = spec_sum / jnp.float32(B * (C - 1) * L)
    else:
        # PyTorch: mean of an empty slice -> NaN.
        spectral = jnp.float32(jnp.nan)
    # alpha / beta applied outside the kernel -> no recompile when they change.
    return jnp.float32(alpha) * mse + jnp.float32(beta) * spectral


def _reference(pred, target, alpha=1.0, beta=0.1):
    pred = pred.astype(jnp.float32)
    target = target.astype(jnp.float32)
    mse = jnp.mean((pred - target) ** 2)
    spectral = jnp.mean(jnp.abs(pred[:, 1:] - pred[:, :-1]))
    return alpha * mse + beta * spectral


if __name__ == "__main__":
    key = jax.random.PRNGKey(0)
    k1, k2, k3, k4, k5, k6 = jax.random.split(key, 6)

    # Case 1: the module's nominal small NCHW shape (single block, no masks).
    pred = jax.random.normal(k1, (2, 4, 16, 16), dtype=jnp.float32)
    target = jax.random.normal(k2, (2, 4, 16, 16), dtype=jnp.float32)
    loss = jax.block_until_ready(spectral_loss(pred, target, alpha=1.0, beta=0.1))
    ref = _reference(pred, target, alpha=1.0, beta=0.1)
    np.testing.assert_allclose(np.asarray(loss), np.asarray(ref),
                               rtol=1e-5, atol=1e-5)

    # Case 2: non-128-aligned spatial size -> in-kernel lane masking (no pad).
    pred2 = jax.random.normal(k3, (3, 6, 10, 12), dtype=jnp.float32)
    target2 = jax.random.normal(k4, (3, 6, 10, 12), dtype=jnp.float32)
    loss2 = jax.block_until_ready(spectral_loss(pred2, target2, alpha=0.7, beta=0.3))
    ref2 = _reference(pred2, target2, alpha=0.7, beta=0.3)
    np.testing.assert_allclose(np.asarray(loss2), np.asarray(ref2),
                               rtol=1e-5, atol=1e-5)

    # Case 3: large-L path -> L tiling, partial last tile, and the extra
    # "parallel" split of the L-tile range (v7x two-TensorCore case).
    pred3 = jax.random.normal(k5, (1, 8, 320, 256), dtype=jnp.float32)
    target3 = jax.random.normal(k6, (1, 8, 320, 256), dtype=jnp.float32)
    loss3 = jax.block_until_ready(spectral_loss(pred3, target3, alpha=1.0, beta=0.1))
    ref3 = _reference(pred3, target3, alpha=1.0, beta=0.1)
    np.testing.assert_allclose(np.asarray(loss3), np.asarray(ref3),
                               rtol=1e-5, atol=1e-5)

    print("KERNEL_OK")
</pallas_src>

<mosaic_0001>
module attributes {stable_mosaic.version = 11 : i64} {
  func.func @_spectral_loss_kernel(%arg0: i32, %arg1: i32, %arg2: i32, %arg3: memref<2x4x256xf32, #tpu.memory_space<vmem>>, %arg4: memref<2x4x256xf32, #tpu.memory_space<vmem>>, %arg5: memref<1x1x1x128xf32, #tpu.memory_space<vmem>>) attributes {dimension_semantics = [#tpu.dimension_semantics<parallel>, #tpu.dimension_semantics<parallel>, #tpu.dimension_semantics<arbitrary>], iteration_bounds = array<i64: 1, 1, 1>, scalar_prefetch = 0 : i64, scratch_operands = 0 : i64, tpu.core_type = #tpu.core_type<tc>, window_params = [{transform_indices = @transform_0, window_bounds = array<i64: 2, 4, 256>}, {transform_indices = @transform_1, window_bounds = array<i64: 2, 4, 256>}, {transform_indices = @transform_2, window_bounds = array<i64: 1, 1, 1, 128>}]} {
    %c0_i32 = arith.constant 0 : i32
    %0 = arith.cmpi eq, %arg2, %c0_i32 : i32
    %1 = arith.extui %0 : i1 to i32
    %c0_i32_0 = arith.constant 0 : i32
    %2 = arith.cmpi ne, %1, %c0_i32_0 : i32
    scf.if %2 {
      %cst_17 = arith.constant 0.000000e+00 : f32
      %32 = vector.broadcast %cst_17 : f32 to vector<1x1x1x128xf32>
      %c0_18 = arith.constant 0 : index
      %c0_19 = arith.constant 0 : index
      %c0_20 = arith.constant 0 : index
      %c0_21 = arith.constant 0 : index
      %33 = vector.load %arg5[%c0_18, %c0_19, %c0_20, %c0_21] : memref<1x1x1x128xf32, #tpu.memory_space<vmem>>, vector<1x1x1x128xf32>
      tpu.vector_store %arg5[%c0_18, %c0_19, %c0_20, %c0_21], %32 {strides = array<i32>} : memref<1x1x1x128xf32, #tpu.memory_space<vmem>>, vector<1x1x1x128xf32>,
    } else {
    }
    %c0 = arith.constant 0 : index
    %c0_1 = arith.constant 0 : index
    %c0_2 = arith.constant 0 : index
    %3 = vector.load %arg3[%c0, %c0_1, %c0_2] : memref<2x4x256xf32, #tpu.memory_space<vmem>>, vector<2x4x256xf32>
    %c0_3 = arith.constant 0 : index
    %c0_4 = arith.constant 0 : index
    %c0_5 = arith.constant 0 : index
    %4 = vector.load %arg4[%c0_3, %c0_4, %c0_5] : memref<2x4x256xf32, #tpu.memory_space<vmem>>, vector<2x4x256xf32>
    %5 = arith.subf %3, %4 : vector<2x4x256xf32>
    %6 = arith.mulf %5, %5 : vector<2x4x256xf32>
    %7 = vector.shape_cast %6 : vector<2x4x256xf32> to vector<1x2x4x256xf32>
    %cst = arith.constant dense<0.000000e+00> : vector<1xf32>
    %8 = vector.multi_reduction <add>, %7, %cst [1, 2, 3] : vector<1x2x4x256xf32> to vector<1xf32>
    %9 = vector.shape_cast %8 : vector<1xf32> to vector<1x1x1x1xf32>
    %10 = vector.extract %9[0, 0, 0, 0] : f32 from vector<1x1x1x1xf32>
    %11 = vector.extract_strided_slice %3 {offsets = [0, 1, 0], sizes = [2, 3, 256], strides = [1, 1, 1]} : vector<2x4x256xf32> to vector<2x3x256xf32>
    %12 = vector.extract_strided_slice %3 {offsets = [0, 0, 0], sizes = [2, 3, 256], strides = [1, 1, 1]} : vector<2x4x256xf32> to vector<2x3x256xf32>
    %13 = arith.subf %11, %12 : vector<2x3x256xf32>
    %14 = math.absf %13 : vector<2x3x256xf32>
    %15 = vector.shape_cast %14 : vector<2x3x256xf32> to vector<1x2x3x256xf32>
    %cst_6 = arith.constant dense<0.000000e+00> : vector<1xf32>
    %16 = vector.multi_reduction <add>, %15, %cst_6 [1, 2, 3] : vector<1x2x3x256xf32> to vector<1xf32>
    %17 = vector.shape_cast %16 : vector<1xf32> to vector<1x1x1x1xf32>
    %18 = vector.extract %17[0, 0, 0, 0] : f32 from vector<1x1x1x1xf32>
    %19 = tpu.iota {dimensions = array<i32: 3>} : vector<1x1x1x128xi32>
    %c0_7 = arith.constant 0 : index
    %c0_8 = arith.constant 0 : index
    %c0_9 = arith.constant 0 : index
    %c0_10 = arith.constant 0 : index
    %20 = vector.load %arg5[%c0_7, %c0_8, %c0_9, %c0_10] : memref<1x1x1x128xf32, #tpu.memory_space<vmem>>, vector<1x1x1x128xf32>
    %c0_i32_11 = arith.constant 0 : i32
    %21 = vector.broadcast %c0_i32_11 : i32 to vector<1x1x1x128xi32>
    %22 = arith.cmpi eq, %19, %21 : vector<1x1x1x128xi32>
    %c1_i32 = arith.constant 1 : i32
    %23 = vector.broadcast %c1_i32 : i32 to vector<1x1x1x128xi32>
    %24 = arith.cmpi eq, %19, %23 : vector<1x1x1x128xi32>
    %cst_12 = arith.constant 0.000000e+00 : f32
    %25 = vector.broadcast %18 : f32 to vector<1x1x1x128xf32>
    %26 = vector.broadcast %cst_12 : f32 to vector<1x1x1x128xf32>
    %27 = arith.select %24, %25, %26 : vector<1x1x1x128xi1>, vector<1x1x1x128xf32>
    %28 = vector.broadcast %10 : f32 to vector<1x1x1x128xf32>
    %29 = arith.select %22, %28, %27 : vector<1x1x1x128xi1>, vector<1x1x1x128xf32>
    %30 = arith.addf %20, %29 : vector<1x1x1x128xf32>
    %c0_13 = arith.constant 0 : index
    %c0_14 = arith.constant 0 : index
    %c0_15 = arith.constant 0 : index
    %c0_16 = arith.constant 0 : index
    %31 = vector.load %arg5[%c0_13, %c0_14, %c0_15, %c0_16] : memref<1x1x1x128xf32, #tpu.memory_space<vmem>>, vector<1x1x1x128xf32>
    tpu.vector_store %arg5[%c0_13, %c0_14, %c0_15, %c0_16], %30 {strides = array<i32>} : memref<1x1x1x128xf32, #tpu.memory_space<vmem>>, vector<1x1x1x128xf32>,
    return
  }
  func.func @transform_0(%arg0: i32, %arg1: i32, %arg2: i32) -> (i32, i32, i32) {
    %c1_i32 = arith.constant 1 : i32
    %0 = arith.muli %arg1, %c1_i32 : i32
    %1 = arith.addi %0, %arg2 : i32
    %c0_i32 = arith.constant 0 : i32
    %c0_i32_0 = arith.constant 0 : i32
    return %arg0, %c0_i32, %1 : i32, i32, i32
  }
  func.func @transform_1(%arg0: i32, %arg1: i32, %arg2: i32) -> (i32, i32, i32) {
    %c1_i32 = arith.constant 1 : i32
    %0 = arith.muli %arg1, %c1_i32 : i32
    %1 = arith.addi %0, %arg2 : i32
    %c0_i32 = arith.constant 0 : i32
    %c0_i32_0 = arith.constant 0 : i32
    return %arg0, %c0_i32, %1 : i32, i32, i32
  }
  func.func @transform_2(%arg0: i32, %arg1: i32, %arg2: i32) -> (i32, i32, i32, i32) {
    %c0_i32 = arith.constant 0 : i32
    %c0_i32_0 = arith.constant 0 : i32
    %c0_i32_1 = arith.constant 0 : i32
    return %arg0, %arg1, %c0_i32, %c0_i32_0 : i32, i32, i32, i32
  }
}

</mosaic_0001>

<bundles_post_ra>
// kernel: tpu_custom_call.1
= control target key start
LH: loop header
LB: loop body
LE: loop exit
PB: predicated region body
PF: predicated region fallthrough
CT: control target
= control target key end

     0   :  { %7 = vsyncpa [#allocation3], 0  ;;  %s290_s0 = inlined_call_operand.hbm [shape: f32[2,4,256], index: 0, kind: input, shape index: {}]   ;;  %s291_s1 = inlined_call_operand.hbm [shape: f32[2,4,256], index: 1, kind: input, shape index: {}]   ;;  %s292_s2 = inlined_call_operand.hbm [shape: f32[1,1,1,128], index: 2, kind: output, shape index: {}]  }
   0x1   :  { %8 = vsyncpa [#allocation6], 0 }
   0x2   :  { %9 = vsyncpa [#allocation4], 0  ;;  %s18_s11 = sshll.u32 %s290_s0, 4  ;;  %s260_s12 = smov [#allocation2]   ;;  %s19_s11 = int_to_ptr.hbm [resolvable:$true] %s18_s11 }
   0x3   :  { %s20_s13 = sshll.u32 %s260_s12, 4  ;;  %s35_s16 = sshll.u32 %s291_s1, 4  ;;  %s21_s13 = int_to_ptr.vmem [resolvable:$true] %s20_s13  ;;  %s36_s16 = int_to_ptr.hbm [resolvable:$true] %s35_s16 }
   0x4   :  { %s261_s17 = smov 128   ;;  %s262_s18 = smov 8  }
   0x5   :  { %26 = dma.hbm_to_vmem [thread:$0]  %s19_s11, 256, %s21_s13, [#allocation3], %s261_s17, %s261_s17, %s262_s18  }
   0x6   :  { %s263_s19 = smov [#allocation5]  }
   0x7   :  { %s37_s20 = sshll.u32 %s263_s19, 4  ;;  %s38_s20 = int_to_ptr.vmem [resolvable:$true] %s37_s20 }
   0x8   :  { %43 = dma.hbm_to_vmem [thread:$0]  %s36_s16, 256, %s38_s20, [#allocation6], %s261_s17, %s261_s17, %s262_s18  }
   0x9   :  { %254 = dma.done.wait [#allocation3], 256  }
   0xa   :  { %255 = vsyncadd [#allocation3], 4294967040 }
   0xb   :  { %256 = dma.done.wait [#allocation6], 256  }
   0xc   :  { %257 = vsyncadd [#allocation6], 4294967040  ;;  %v61_v0 = vld [vmem:[#allocation2] sm:$0xff]  ;;  %v62_v1 = vld [vmem:[#allocation2 + $0x8] sm:$0xff]  ;;  %vm82_vm0 = vcmask 1043456   ;;  %vm126_vm1 = vcmask 1042432   ;;  %v143_v55 = vlaneseq }
   0xd   :  { %v63_v2 = vld [vmem:[#allocation5] sm:$0xff]  ;;  %v64_v3 = vld [vmem:[#allocation5 + $0x8] sm:$0xff]  ;;  %v101_v6 = vrot.slane %v61_v0, 7  ;;  %v102_v8 = vrot.slane %v62_v1, 7  ;;  %v264_v54 = vmov 0.0   ;;  %s265_s21 = smov [#allocation7]  }
   0xe   :  { %v65_v4 = vsub.f32 %v61_v0, %v63_v2  ;;  %v66_v5 = vsub.f32 %v62_v1, %v64_v3  ;;  %60 = vst [vmem:[#allocation7] sm:$0x1] %v264_v54  ;;  %v144_v56 = vand.u32 127, %v143_v55  ;;  %s159_s22 = sshll.u32 %s265_s21, 4  ;;  %s161_s25 = sshll.u32 %s292_s2, 4  ;;  %s160_s22 = int_to_ptr.vmem [resolvable:$true] %s159_s22  ;;  %s162_s25 = int_to_ptr.hbm [resolvable:$true] %s161_s25 }
   0xf   :  { %v105_v10 = vsub.f32 %v61_v0, %v101_v6  ;;  %v106_v11 = vsub.f32 %v62_v1, %v102_v8 }
  0x10   :  { %v67_v7 = vmul.f32 %v65_v4, %v65_v4  ;;  %v68_v9 = vmul.f32 %v66_v5, %v66_v5  ;;  %vm147_vm2 = vcmp.eq.s32.totalorder %v144_v56, 1  ;;  %vm146_vm3 = vcmp.eq.s32.totalorder %v144_v56, 0 }
  0x11   :  { %v107_v12 = vand.u32 2147483647, %v105_v10  ;;  %v108_v13 = vand.u32 2147483647, %v106_v11 }
  0x12   :  { %71 = vst [vmem:[#allocation1] ss:$2 sm:$0xff] %v67_v7 }
  0x13   :  { %75 = vst [vmem:[#allocation1 + $0x10] ss:$2 sm:$0xff] %v68_v9 }
  0x15   :  { %v145_v57 = vld [vmem:[#allocation7] sm:$0x1] }
  0x19   :  { %v72_v14 = vld.sshfl [vmem:[#allocation1] sm:$0xff pattern:$0x75316420]  ;;  %v73_v15 = vld.sshfl [vmem:[#allocation1 + $0x8] sm:$0xff pattern:$0x75316420] }
  0x1a   :  { %v76_v16 = vld.sshfl [vmem:[#allocation1 + $0x10] sm:$0xff pattern:$0x75316420]  ;;  %v77_v17 = vld.sshfl [vmem:[#allocation1 + $0x18] sm:$0xff pattern:$0x75316420] }
  0x1b   :  { %v83_v18 = vsel %vm82_vm0, %v72_v14, 0.0  ;;  %v84_v19 = vsel %vm82_vm0, %v73_v15, 0.0  ;;  %v86_v20 = vsel %vm82_vm0, %v76_v16, 0.0  ;;  %111 = vst [vmem:[#allocation1] ss:$2 sm:$0xff] %v107_v12  ;;  %v88_v22 = vsel %vm82_vm0, %v77_v17, 0.0 }
  0x1c   :  { %v85_v21 = vadd.f32 %v84_v19, %v83_v18  ;;  %115 = vst [vmem:[#allocation1 + $0x10] ss:$2 sm:$0xff] %v108_v13 }
  0x1e   :  { %v87_v23 = vadd.f32 %v86_v20, %v85_v21 }
  0x20   :  { %v89_v24 = vadd.f32 %v88_v22, %v87_v23 }
  0x22   :  { %90 = vadd.xlane.f32.xlu0 %v89_v24  ;;  %v112_v25 = vld.sshfl [vmem:[#allocation1] sm:$0xff pattern:$0x75316420]  ;;  %v113_v26 = vld.sshfl [vmem:[#allocation1 + $0x8] sm:$0xff pattern:$0x75316420] }
  0x23   :  { %v116_v27 = vld.sshfl [vmem:[#allocation1 + $0x10] sm:$0xff pattern:$0x75316420]  ;;  %v117_v28 = vld.sshfl [vmem:[#allocation1 + $0x18] sm:$0xff pattern:$0x75316420] }
  0x24   :  { %v118_v29 = vrot.slane %v112_v25, 1  ;;  %v119_v30 = vrot.slane %v113_v26, 1  ;;  %v120_v31 = vrot.slane %v116_v27, 1  ;;  %v121_v32 = vrot.slane %v117_v28, 1 }
  0x26   :  { %v127_v33 = vsel %vm126_vm1, %v118_v29, 0.0  ;;  %v128_v34 = vsel %vm126_vm1, %v119_v30, 0.0  ;;  %v130_v35 = vsel %vm126_vm1, %v120_v31, 0.0  ;;  %v132_v37 = vsel %vm126_vm1, %v121_v32, 0.0 }
  0x27   :  { %v129_v36 = vadd.f32 %v128_v34, %v127_v33 }
  0x29   :  { %v131_v38 = vadd.f32 %v130_v35, %v129_v36 }
  0x2b   :  { %v133_v39 = vadd.f32 %v132_v37, %v131_v38 }
  0x2d   :  { %134 = vadd.xlane.f32.xlu0 %v133_v39 }
  0x95   :  { %v91_v40 = vpop.xlane.xlu0 %90 }
  0x96   :  { %v92_v41 = vrot.slane %v91_v40, 4 }
  0x98   :  { %v93_v42 = vadd.f32 %v92_v41, %v91_v40 }
  0x9a   :  { %v94_v43 = vrot.slane %v93_v42, 2 }
  0x9c   :  { %v95_v44 = vadd.f32 %v94_v43, %v93_v42 }
  0x9e   :  { %v96_v45 = vrot.slane %v95_v44, 1 }
  0xa0   :  { %v135_v46 = vpop.xlane.xlu0 %134  ;;  %v97_v47 = vadd.f32 %v96_v45, %v95_v44 }
  0xa1   :  { %v136_v48 = vrot.slane %v135_v46, 4 }
  0xa2   :  { %172 = vpush %v97_v47 }
  0xa3   :  { %v137_v49 = vadd.f32 %v136_v48, %v135_v46 }
  0xa5   :  { %v138_v50 = vrot.slane %v137_v49, 2 }
  0xa7   :  { %v139_v51 = vadd.f32 %v138_v50, %v137_v49 }
  0xa9   :  { %v140_v52 = vrot.slane %v139_v51, 1 }
  0xab   :  { %v141_v53 = vadd.f32 %v140_v52, %v139_v51 }
  0xad   :  { %174 = vpush %v141_v53 }
  0xd3   :  { %s173_s0 = spop %172 }
  0xd4   :  { %v150_v59 = vstv %s173_s0 }
  0xde   :  { %s175_s1 = spop %174 }
  0xdf   :  { %v148_v58 = vstv %s175_s1 }
  0xe0   :  { %v149_v60 = vsel %vm147_vm2, %v148_v58, 0.0 }
  0xe1   :  { %v151_v61 = vsel %vm146_vm3, %v150_v59, %v149_v60 }
  0xe2   :  { %v152_v62 = vadd.f32 %v151_v61, %v145_v57 }
  0xe4   :  { %153 = vst [vmem:[#allocation7] sm:$0x1] %v152_v62 }
  0xe5   :  { %164 = dma.vmem_to_hbm [thread:$0]  %s160_s22, 16, %s162_s25, [#allocation4]  }
  0xe6   :  { %258 = dma.done.wait [#allocation4], 16  }
  0xe7   :  { %259 = vsyncadd [#allocation4], 4294967280 }
  0xe8   :  { %169 = vsyncpa [#allocation3], 1 }
  0xe9   :  { %170 = vsyncpa [#allocation6], 1 }
  0xea   :  { %171 = vsyncpa [#allocation4], 1 }

</bundles_post_ra>
